<compile_context>
chip_gen: v6e
topology: v6e:2x2x1
jax: 0.10.0
libtpu: 0.0.40
codegen_flags: <defaults>
</compile_context>

<pallas_src>
import jax
import jax.numpy as jnp
from jax.experimental import pallas as pl
from jax.experimental.pallas import tpu as pltpu

SMOOTH = 1e-6
THRESHOLD = 0.4

_LANE = 128
_SUBLANE = 8
_CHUNK_ROWS = 512          # per-chunk live range: (512,128) f32 = 256 KiB


def _round_up(x, m):
    return ((x + m - 1) // m) * m


def _sublane_multiple(dtype):
    """Minimum sublane multiple for a dtype: 8 (4B), 16 (2B), 32 (1B)."""
    return max(_SUBLANE, 32 // jnp.dtype(dtype).itemsize)


def _tpu_config():
    """Generation-aware tiling / split configuration."""
    try:
        kind = jax.devices()[0].device_kind.lower()
    except Exception:  # pragma: no cover - defensive
        kind = ""
    if "7" in kind:                       # v7x: 2 TCs, 3.2 TB/s HBM, 64 MiB VMEM
        return dict(max_tile_rows=8192, num_splits=2,
                    vmem_limit=48 * 1024 * 1024)
    if "v6" in kind or "6e" in kind:      # v6e: 1 TC, 128 MiB VMEM
        return dict(max_tile_rows=8192, num_splits=1,
                    vmem_limit=64 * 1024 * 1024)
    if "v5" in kind or "5e" in kind or "lite" in kind:   # v5e
        return dict(max_tile_rows=4096, num_splits=1,
                    vmem_limit=32 * 1024 * 1024)
    # Unknown / older generation: conservative defaults.
    return dict(max_tile_rows=2048, num_splits=1, vmem_limit=32 * 1024 * 1024)


def _make_dice_kernel(total_tiles, tiles_per_split, tail_valid, tile_elems,
                      chunk_rows, num_chunks):
    """Build the kernel closure over static tiling parameters."""
    needs_mask = tail_valid != tile_elems   # static: does the last tile have a tail?

    def kernel(p_ref, t_ref, acc_ref):
        s = pl.program_id(0)          # per-TensorCore partial ("parallel")
        j = pl.program_id(1)          # reduction axis ("arbitrary")

        @pl.when(j == 0)
        def _init():
            acc_ref[...] = jnp.zeros_like(acc_ref)

        g = s * tiles_per_split + j   # global tile id

        def chunk(row0, masked):
            x = p_ref[pl.ds(row0, chunk_rows), :].astype(jnp.float32)
            # sigmoid(x) == 0.5*tanh(0.5*x) + 0.5  -> single EUP op + 2 VALU ops
            p = 0.5 * jnp.tanh(0.5 * x) + 0.5
            t = t_ref[pl.ds(row0, chunk_rows), :].astype(jnp.float32) > THRESHOLD
            if masked:
                # Per-chunk tail mask; covers Pallas pad garbage past n.
                r = jax.lax.broadcasted_iota(jnp.int32, (chunk_rows, _LANE), 0)
                c = jax.lax.broadcasted_iota(jnp.int32, (chunk_rows, _LANE), 1)
                valid = ((row0 + r) * _LANE + c) < tail_valid   # tail_valid static
                p = jnp.where(valid, p, 0.0)
                t = jnp.logical_and(t, valid)
            tf = t.astype(jnp.float32)
            inter = jnp.where(t, p, 0.0)   # == p * t, without the multiply
            pt = p + tf                    # fused sum(p) + sum(t)
            # Row-reduce the chunk to one (8,128) vreg tile: pure VALU adds,
            # no cross-lane XLU reduction in the steady state.
            acc_ref[0, 0, :, :] += inter.reshape(-1, _SUBLANE, _LANE).sum(axis=0)
            acc_ref[0, 1, :, :] += pt.reshape(-1, _SUBLANE, _LANE).sum(axis=0)

        def accumulate(masked):
            if num_chunks == 1:
                chunk(0, masked)
            else:
                def body(ci, carry):
                    row0 = pl.multiple_of(ci * chunk_rows, chunk_rows)
                    chunk(row0, masked)
                    return carry
                jax.lax.fori_loop(0, num_chunks, body, 0)

        if needs_mask:
            @pl.when(g < total_tiles - 1)
            def _body():
                accumulate(False)

            @pl.when(g == total_tiles - 1)
            def _tail():
                accumulate(True)
        else:
            @pl.when(g < total_tiles)
            def _body():
                accumulate(False)

    return kernel


def dice_loss(preds, targets):
    """Pallas implementation of DiceLoss.forward(preds, targets) -> scalar f32."""
    assert preds.shape == targets.shape
    n = preds.size
    cfg = _tpu_config()

    p_flat = jnp.ravel(preds)
    t_flat = jnp.ravel(targets)

    # Only pad to a lane multiple; padded / ragged elements are masked in-kernel,
    # so the pad value is irrelevant.
    n_lane = _round_up(n, _LANE)
    if n_lane != n:
        p_flat = jnp.pad(p_flat, (0, n_lane - n))
        t_flat = jnp.pad(t_flat, (0, n_lane - n))

    rows = n_lane // _LANE
    p2d = p_flat.reshape(rows, _LANE)
    t2d = t_flat.reshape(rows, _LANE)

    # Dtype-aware sublane quantum (8 f32, 16 bf16, 32 int8/fp8).
    row_quantum = max(_sublane_multiple(p2d.dtype), _sublane_multiple(t2d.dtype))
    tile_rows = min(cfg["max_tile_rows"], _round_up(rows, row_quantum))
    if tile_rows > _CHUNK_ROWS:
        # Chunked accumulation: tile must be a whole number of chunks.
        tile_rows = min(cfg["max_tile_rows"], _round_up(rows, _CHUNK_ROWS))
        chunk_rows = _CHUNK_ROWS
    else:
        chunk_rows = tile_rows
    num_chunks = tile_rows // chunk_rows

    tile_elems = tile_rows * _LANE
    total_tiles = pl.cdiv(rows, tile_rows)
    num_splits = min(cfg["num_splits"], total_tiles)
    tiles_per_split = pl.cdiv(total_tiles, num_splits)
    tail_valid = n - (total_tiles - 1) * tile_elems   # valid elems in last tile

    def in_index_map(s, j):
        # Clamp: a core's spill-over iterations re-read the last real tile; the
        # kernel gates their contribution out (g >= total_tiles adds nothing).
        return (jnp.minimum(s * tiles_per_split + j, total_tiles - 1), 0)

    kernel = _make_dice_kernel(total_tiles, tiles_per_split, tail_valid,
                               tile_elems, chunk_rows, num_chunks)

    out_bytes = num_splits * 2 * _SUBLANE * _LANE * 4
    cost = pl.CostEstimate(
        flops=8 * n,
        transcendentals=n,
        bytes_accessed=n * (p2d.dtype.itemsize + t2d.dtype.itemsize) + out_bytes,
    )

    part = pl.pallas_call(
        kernel,
        out_shape=jax.ShapeDtypeStruct((num_splits, 2, _SUBLANE, _LANE),
                                       jnp.float32),
        grid_spec=pltpu.PrefetchScalarGridSpec(
            num_scalar_prefetch=0,
            grid=(num_splits, tiles_per_split),
            in_specs=[
                pl.BlockSpec((tile_rows, _LANE), in_index_map),
                pl.BlockSpec((tile_rows, _LANE), in_index_map),
            ],
            out_specs=pl.BlockSpec((1, 2, _SUBLANE, _LANE),
                                   lambda s, j: (s, 0, 0, 0)),
        ),
        compiler_params=pltpu.CompilerParams(
            dimension_semantics=("parallel", "arbitrary"),
            vmem_limit_bytes=cfg["vmem_limit"],
        ),
        cost_estimate=cost,
    )(p2d, t2d)

    # Tiny epilogue combine in plain JAX (a few KB, negligible traffic).
    intersection = jnp.sum(part[:, 0], dtype=jnp.float32)
    preds_plus_targets_sum = jnp.sum(part[:, 1], dtype=jnp.float32)
    dice = (2.0 * intersection + SMOOTH) / (preds_plus_targets_sum + SMOOTH)
    return (1.0 - dice).astype(jnp.float32)


def dice_loss_ref(preds, targets):
    """Pure-JAX reference mirroring the PyTorch module."""
    p = jax.nn.sigmoid(preds.astype(jnp.float32)).reshape(-1)
    t = (targets.astype(jnp.float32) > THRESHOLD).astype(jnp.float32).reshape(-1)
    inter = jnp.sum(p * t)
    dice = (2.0 * inter + SMOOTH) / (jnp.sum(p) + jnp.sum(t) + SMOOTH)
    return 1.0 - dice


def _check(shape, key, dtype=jnp.float32):
    k1, k2 = jax.random.split(key)
    preds = jax.random.normal(k1, shape, dtype=jnp.float32).astype(dtype)
    targets = jax.random.uniform(k2, shape, dtype=jnp.float32).astype(dtype)
    out = jax.block_until_ready(dice_loss(preds, targets))
    ref = jax.block_until_ready(dice_loss_ref(preds, targets))
    assert jnp.allclose(out, ref, atol=1e-4, rtol=1e-4), (shape, dtype, out, ref)
    return out


if __name__ == "__main__":
    key = jax.random.PRNGKey(0)
    k0, k1, k2, k3 = jax.random.split(key, 4)

    # Primary case: small NCHW logits + soft targets from a UNet segmentation head.
    _check((2, 4, 16, 16), k0)
    # Exercises the in-kernel tail mask (element count not lane-aligned, ragged block).
    _check((2, 3, 37, 29), k1)
    # Exercises the multi-chunk fori_loop path (and multi-tile / 2-way split on v7x).
    _check((4, 4, 128, 160), k2)
    # Exercises bf16 streaming with the dtype-aware sublane quantum.
    _check((2, 3, 37, 29), k3, dtype=jnp.bfloat16)

    print("KERNEL_OK")
</pallas_src>

<mosaic_0001>
module attributes {stable_mosaic.version = 11 : i64} {
  func.func @kernel(%arg0: i32, %arg1: i32, %arg2: memref<16x128xf32, #tpu.memory_space<vmem>>, %arg3: memref<16x128xf32, #tpu.memory_space<vmem>>, %arg4: memref<1x2x8x128xf32, #tpu.memory_space<vmem>>) attributes {dimension_semantics = [#tpu.dimension_semantics<parallel>, #tpu.dimension_semantics<arbitrary>], iteration_bounds = array<i64: 1, 1>, scalar_prefetch = 0 : i64, scratch_operands = 0 : i64, tpu.core_type = #tpu.core_type<tc>, window_params = [{transform_indices = @transform_0, window_bounds = array<i64: 16, 128>}, {transform_indices = @transform_1, window_bounds = array<i64: 16, 128>}, {transform_indices = @transform_2, window_bounds = array<i64: 1, 2, 8, 128>}]} {
    %c0_i32 = arith.constant 0 : i32
    %0 = arith.cmpi eq, %arg1, %c0_i32 : i32
    %1 = arith.extui %0 : i1 to i32
    %c0_i32_0 = arith.constant 0 : i32
    %2 = arith.cmpi ne, %1, %c0_i32_0 : i32
    scf.if %2 {
      %cst = arith.constant 0.000000e+00 : f32
      %8 = vector.broadcast %cst : f32 to vector<1x2x8x128xf32>
      %c0 = arith.constant 0 : index
      %c0_3 = arith.constant 0 : index
      %c0_4 = arith.constant 0 : index
      %c0_5 = arith.constant 0 : index
      %9 = vector.load %arg4[%c0, %c0_3, %c0_4, %c0_5] : memref<1x2x8x128xf32, #tpu.memory_space<vmem>>, vector<1x2x8x128xf32>
      tpu.vector_store %arg4[%c0, %c0_3, %c0_4, %c0_5], %8 {strides = array<i32>} : memref<1x2x8x128xf32, #tpu.memory_space<vmem>>, vector<1x2x8x128xf32>,
    } else {
    }
    %c1_i32 = arith.constant 1 : i32
    %3 = arith.muli %arg0, %c1_i32 : i32
    %4 = arith.addi %3, %arg1 : i32
    %c1_i32_1 = arith.constant 1 : i32
    %5 = arith.cmpi slt, %4, %c1_i32_1 : i32
    %6 = arith.extui %5 : i1 to i32
    %c0_i32_2 = arith.constant 0 : i32
    %7 = arith.cmpi ne, %6, %c0_i32_2 : i32
    scf.if %7 {
      %c0 = arith.constant 0 : index
      %c0_3 = arith.constant 0 : index
      %8 = vector.load %arg2[%c0, %c0_3] : memref<16x128xf32, #tpu.memory_space<vmem>>, vector<16x128xf32>
      %cst = arith.constant 5.000000e-01 : f32
      %9 = vector.broadcast %cst : f32 to vector<16x128xf32>
      %10 = arith.mulf %9, %8 : vector<16x128xf32>
      %11 = math.tanh %10 : vector<16x128xf32>
      %cst_4 = arith.constant 5.000000e-01 : f32
      %12 = vector.broadcast %cst_4 : f32 to vector<16x128xf32>
      %13 = arith.mulf %12, %11 : vector<16x128xf32>
      %cst_5 = arith.constant 5.000000e-01 : f32
      %14 = vector.broadcast %cst_5 : f32 to vector<16x128xf32>
      %15 = arith.addf %13, %14 : vector<16x128xf32>
      %c0_6 = arith.constant 0 : index
      %c0_7 = arith.constant 0 : index
      %16 = vector.load %arg3[%c0_6, %c0_7] : memref<16x128xf32, #tpu.memory_space<vmem>>, vector<16x128xf32>
      %cst_8 = arith.constant 4.000000e-01 : f32
      %17 = vector.broadcast %cst_8 : f32 to vector<16x128xf32>
      %18 = arith.cmpf ogt, %16, %17 : vector<16x128xf32>
      %19 = arith.extui %18 : vector<16x128xi1> to vector<16x128xi32>
      %20 = arith.sitofp %19 : vector<16x128xi32> to vector<16x128xf32>
      %cst_9 = arith.constant 0.000000e+00 : f32
      %21 = vector.broadcast %cst_9 : f32 to vector<16x128xf32>
      %22 = arith.select %18, %15, %21 : vector<16x128xi1>, vector<16x128xf32>
      %23 = arith.addf %15, %20 : vector<16x128xf32>
      %c0_10 = arith.constant 0 : index
      %c0_11 = arith.constant 0 : index
      %c0_12 = arith.constant 0 : index
      %c0_13 = arith.constant 0 : index
      %24 = vector.load %arg4[%c0_10, %c0_11, %c0_12, %c0_13] : memref<1x2x8x128xf32, #tpu.memory_space<vmem>>, vector<1x1x8x128xf32>
      %25 = vector.shape_cast %24 : vector<1x1x8x128xf32> to vector<8x128xf32>
      %26 = vector.shape_cast %22 : vector<16x128xf32> to vector<2x8x128xf32>
      %cst_14 = arith.constant dense<0.000000e+00> : vector<8x128xf32>
      %27 = vector.multi_reduction <add>, %26, %cst_14 [0] : vector<2x8x128xf32> to vector<8x128xf32>
      %28 = arith.addf %25, %27 : vector<8x128xf32>
      %c0_15 = arith.constant 0 : index
      %c0_16 = arith.constant 0 : index
      %c0_17 = arith.constant 0 : index
      %c0_18 = arith.constant 0 : index
      %29 = vector.load %arg4[%c0_15, %c0_16, %c0_17, %c0_18] : memref<1x2x8x128xf32, #tpu.memory_space<vmem>>, vector<1x1x8x128xf32>
      %30 = vector.shape_cast %29 : vector<1x1x8x128xf32> to vector<8x128xf32>
      %31 = vector.shape_cast %28 : vector<8x128xf32> to vector<1x1x8x128xf32>
      tpu.vector_store %arg4[%c0_15, %c0_16, %c0_17, %c0_18], %31 {strides = array<i32>} : memref<1x2x8x128xf32, #tpu.memory_space<vmem>>, vector<1x1x8x128xf32>,
      %c0_19 = arith.constant 0 : index
      %c1 = arith.constant 1 : index
      %c0_20 = arith.constant 0 : index
      %c0_21 = arith.constant 0 : index
      %32 = vector.load %arg4[%c0_19, %c1, %c0_20, %c0_21] : memref<1x2x8x128xf32, #tpu.memory_space<vmem>>, vector<1x1x8x128xf32>
      %33 = vector.shape_cast %32 : vector<1x1x8x128xf32> to vector<8x128xf32>
      %34 = vector.shape_cast %23 : vector<16x128xf32> to vector<2x8x128xf32>
      %cst_22 = arith.constant dense<0.000000e+00> : vector<8x128xf32>
      %35 = vector.multi_reduction <add>, %34, %cst_22 [0] : vector<2x8x128xf32> to vector<8x128xf32>
      %36 = arith.addf %33, %35 : vector<8x128xf32>
      %c0_23 = arith.constant 0 : index
      %c1_24 = arith.constant 1 : index
      %c0_25 = arith.constant 0 : index
      %c0_26 = arith.constant 0 : index
      %37 = vector.load %arg4[%c0_23, %c1_24, %c0_25, %c0_26] : memref<1x2x8x128xf32, #tpu.memory_space<vmem>>, vector<1x1x8x128xf32>
      %38 = vector.shape_cast %37 : vector<1x1x8x128xf32> to vector<8x128xf32>
      %39 = vector.shape_cast %36 : vector<8x128xf32> to vector<1x1x8x128xf32>
      tpu.vector_store %arg4[%c0_23, %c1_24, %c0_25, %c0_26], %39 {strides = array<i32>} : memref<1x2x8x128xf32, #tpu.memory_space<vmem>>, vector<1x1x8x128xf32>,
    } else {
    }
    return
  }
  func.func @transform_0(%arg0: i32, %arg1: i32) -> (i32, i32) {
    %c1_i32 = arith.constant 1 : i32
    %0 = arith.muli %arg0, %c1_i32 : i32
    %1 = arith.addi %0, %arg1 : i32
    %c0_i32 = arith.constant 0 : i32
    %2 = arith.minsi %1, %c0_i32 : i32
    %c0_i32_0 = arith.constant 0 : i32
    %c0_i32_1 = arith.constant 0 : i32
    return %2, %c0_i32_0 : i32, i32
  }
  func.func @transform_1(%arg0: i32, %arg1: i32) -> (i32, i32) {
    %c1_i32 = arith.constant 1 : i32
    %0 = arith.muli %arg0, %c1_i32 : i32
    %1 = arith.addi %0, %arg1 : i32
    %c0_i32 = arith.constant 0 : i32
    %2 = arith.minsi %1, %c0_i32 : i32
    %c0_i32_0 = arith.constant 0 : i32
    %c0_i32_1 = arith.constant 0 : i32
    return %2, %c0_i32_0 : i32, i32
  }
  func.func @transform_2(%arg0: i32, %arg1: i32) -> (i32, i32, i32, i32) {
    %c0_i32 = arith.constant 0 : i32
    %c0_i32_0 = arith.constant 0 : i32
    %c0_i32_1 = arith.constant 0 : i32
    %c0_i32_2 = arith.constant 0 : i32
    return %arg0, %c0_i32, %c0_i32_0, %c0_i32_1 : i32, i32, i32, i32
  }
}

</mosaic_0001>

<bundles_post_ra>
// kernel: tpu_custom_call.1
= control target key start
LH: loop header
LB: loop body
LE: loop exit
PB: predicated region body
PF: predicated region fallthrough
CT: control target
= control target key end

     0   :  { %7 = vsyncpa [#allocation3], 0  ;;  %s241_s0 = inlined_call_operand.hbm [shape: f32[16,128], index: 0, kind: input, shape index: {}]   ;;  %s242_s1 = inlined_call_operand.hbm [shape: f32[16,128], index: 1, kind: input, shape index: {}]   ;;  %s243_s2 = inlined_call_operand.hbm [shape: f32[1,2,8,128], index: 2, kind: output, shape index: {}]  }
   0x1   :  { %8 = vsyncpa [#allocation6], 0 }
   0x2   :  { %9 = vsyncpa [#allocation4], 0  ;;  %s202_s9 = smov [#allocation2]  }
   0x3   :  { %s21_s10 = sshll.u32 %s202_s9, 4  ;;  %s22_s10 = int_to_ptr.vmem [resolvable:$true] %s21_s10 }
   0x4   :  { %s144_s11 = scalar_lea.vmem %s22_s10, 256  ;;  %p149_p1 = scmp.lt.s32.totalorder %s22_s10, %s22_s10 }
   0x5   :  { %p145_p0 = scmp.ne.s32.totalorder %s22_s10, %s144_s11  ;;  %p150_p2 = scmp.lt.s32.totalorder %s144_s11, %s144_s11 }
   0x7   :  { %p151_p3 = por %p150_p2, %p149_p1 }
   0x9   :  { %p152_p4 = pnand %p151_p3, %p145_p0 }
   0xb   :  { %155 = shalt.err (!%p152_p4)
}
   0xc   :  { %s203_s12 = smov 128   ;;  %s204_s13 = smov 8  }
   0xd   :  { %27 = dma.hbm_to_vmem [thread:$0]  %s241_s0, 256, %s22_s10, [#allocation3], %s203_s12, %s203_s12, %s204_s13  }
   0xe   :  { %s205_s16 = smov [#allocation5]  }
   0xf   :  { %s39_s17 = sshll.u32 %s205_s16, 4  ;;  %s40_s17 = int_to_ptr.vmem [resolvable:$true] %s39_s17 }
  0x10   :  { %s164_s18 = scalar_lea.vmem %s40_s17, 256  ;;  %p169_p6 = scmp.lt.s32.totalorder %s40_s17, %s40_s17 }
  0x11   :  { %p165_p5 = scmp.ne.s32.totalorder %s40_s17, %s164_s18  ;;  %p170_p7 = scmp.lt.s32.totalorder %s164_s18, %s164_s18 }
  0x13   :  { %p171_p8 = por %p170_p7, %p169_p6 }
  0x15   :  { %p172_p9 = pnand %p171_p8, %p165_p5 }
  0x17   :  { %175 = shalt.err (!%p172_p9)
}
  0x18   :  { %45 = dma.hbm_to_vmem [thread:$0]  %s242_s1, 256, %s40_s17, [#allocation6], %s203_s12, %s203_s12, %s204_s13  }
  0x19   :  { %196 = dma.done.wait [#allocation3], 256  }
  0x1a   :  { %197 = vsyncadd [#allocation3], 4294967040 }
  0x1b   :  { %198 = dma.done.wait [#allocation6], 256  }
  0x1c   :  { %199 = vsyncadd [#allocation6], 4294967040  ;;  %v71_v0 = vld [vmem:[#allocation2] sm:$0xff]  ;;  %v72_v1 = vld [vmem:[#allocation2 + $0x8] sm:$0xff]  ;;  %v206_v9 = vmov 0.0   ;;  %s207_s0 = smov [#allocation7]  }
  0x1d   :  { %v73_v2 = vmul.f32 0.5, %v71_v0  ;;  %v74_v3 = vmul.f32 0.5, %v72_v1  ;;  %v81_v4 = vld [vmem:[#allocation5] sm:$0xff]  ;;  %v82_v5 = vld [vmem:[#allocation5 + $0x8] sm:$0xff]  ;;  %s107_s1 = sshll.u32 %s207_s0, 4  ;;  %s108_s1 = int_to_ptr.vmem [resolvable:$true] %s107_s1 }
  0x1e   :  { %vm83_vm0 = vcmp.gt.f32.partialorder %v81_v4, 0.4  ;;  %vm84_vm1 = vcmp.gt.f32.partialorder %v82_v5, 0.4  ;;  %s176_s21 = scalar_lea.vmem %s108_s1, 256  ;;  %p181_p11 = scmp.lt.s32.totalorder %s108_s1, %s108_s1 }
  0x1f   :  { %132 = vtanh.f32 %v73_v2  ;;  %v124_v10 = vsel %vm83_vm0, 1.0, %v206_v9  ;;  %v125_v12 = vsel %vm84_vm1, 1.0, %v206_v9  ;;  %p177_p10 = scmp.ne.s32.totalorder %s108_s1, %s176_s21  ;;  %p182_p12 = scmp.lt.s32.totalorder %s176_s21, %s176_s21 }
  0x20   :  { %134 = vtanh.f32 %v74_v3 }
  0x21   :  { %p183_p13 = por %p182_p12, %p181_p11 }
  0x23   :  { %p184_p0 = pnand %p183_p13, %p177_p10 }
  0x2c   :  { %v133_v6 = vpop.eup %132 }
  0x2d   :  { %v135_v7 = vpop.eup %134  ;;  %v77_v8 = vmul.f32 0.5, %v133_v6 }
  0x2e   :  { %v78_v11 = vmul.f32 0.5, %v135_v7 }
  0x2f   :  { %v79_v13 = vadd.f32 0.5, %v77_v8 }
  0x30   :  { %v80_v14 = vadd.f32 0.5, %v78_v11 }
  0x31   :  { %v89_v15 = vsel %vm83_vm0, %v79_v13, 0.0  ;;  %v91_v16 = vadd.f32 %v124_v10, %v79_v13 }
  0x32   :  { %v90_v17 = vsel %vm84_vm1, %v80_v14, 0.0  ;;  %v92_v18 = vadd.f32 %v125_v12, %v80_v14 }
  0x33   :  { %v94_v19 = vadd.f32 %v90_v17, %v89_v15 }
  0x34   :  { %v99_v20 = vadd.f32 %v92_v18, %v91_v16 }
  0x35   :  { %96 = vst [vmem:[#allocation7] sm:$0xff] %v94_v19 }
  0x36   :  { %101 = vst [vmem:[#allocation7 + $0x8] sm:$0xff] %v99_v20 }
  0x37   :  { %187 = shalt.err (!%p184_p0)
}
  0x38   :  { %113 = dma.vmem_to_hbm [thread:$0]  %s108_s1, 256, %s243_s2, [#allocation4], %s203_s12, %s203_s12, %s204_s13  }
  0x39   :  { %200 = dma.done.wait [#allocation4], 256  }
  0x3a   :  { %201 = vsyncadd [#allocation4], 4294967040 }
  0x3b   :  { %117 = vsyncpa [#allocation3], 1 }
  0x3c   :  { %118 = vsyncpa [#allocation6], 1 }
  0x3d   :  { %119 = vsyncpa [#allocation4], 1 }

</bundles_post_ra>
